<compile_context>
chip_gen: v7x
topology: tpu7x:2x2x1
jax: 0.10.0
libtpu: 0.0.40
codegen_flags: <defaults>
</compile_context>

<pallas_src>
import functools

import jax
import jax.numpy as jnp
from jax import lax
from jax.experimental import pallas as pl
from jax.experimental.pallas import tpu as pltpu

# ---- "para" configuration (module-level constants in the reference code) ----
BOX_CODE_LEN = 6
ESTIMATE_DIR = True
FOCAL_LOSS_VER = 0
NUM_CH = 1 + BOX_CODE_LEN + 1  # cls | loc(6) | dir  = 8

_EPS = 1e-5
_ALPHA = 0.25
_COLS = 1024            # lanes per row: multiple of 128 and of NUM_CH
_MAX_BLOCK_ROWS = 512   # 512 x 1024 f32 = 2 MiB per input per grid step
_MIN_TILES = 2          # keep both v7x TensorCores busy via the parallel axis


def _loss_tile_kernel(*refs, has_mask, rows_total, block_rows, ragged):
    """One (block_rows, 1024) tile of the interleaved [pixel-major, ch-minor] stream.

    Writes a (1, 2048) partial-sum slab:
      lanes [0:1024]    per-lane loss partial sums (lane % 8 = channel),
      lanes [1024:2048] per-lane positive-count partial sums (nonzero cls).
    """
    if has_mask:
        p_ref, t_ref, m_ref, out_ref = refs
    else:
        p_ref, t_ref, out_ref = refs
        m_ref = None

    # Native-dtype DMA, cast on the VPU (free) instead of a wrapper HBM pass.
    p = p_ref[...].astype(jnp.float32)          # (BR, 1024)
    t = t_ref[...].astype(jnp.float32)          # (BR, 1024)
    shape = p.shape

    # channel id of every lane (lane % 8).
    ch = lax.broadcasted_iota(jnp.int32, shape, 1) & (NUM_CH - 1)
    is_cls = ch == 0
    is_loc = jnp.logical_and(ch > 0, ch < NUM_CH - 1)
    is_dir = ch == NUM_CH - 1

    # Broadcast each pixel's cls target (channel 0) across its 8 lanes with
    # three log-step XLU lane rolls (positive shift -> higher lane index).
    # 1024 is a multiple of 8, so wraparound never crosses a pixel group.
    cls_b = jnp.where(is_cls, t, 0.0)
    cls_b = cls_b + pltpu.roll(cls_b, 1, 1)
    cls_b = cls_b + pltpu.roll(cls_b, 2, 1)
    cls_b = cls_b + pltpu.roll(cls_b, 4, 1)

    # ---- focal loss (ver 0), gamma = 2, on cls lanes ----
    # x_t is forced to 1.0 off-cls, so one_m_xt == 0 there and fl is exactly
    # zero without any trailing select.
    two_t_m1 = 2.0 * t - 1.0
    one_m_t = 1.0 - t
    x_t = jnp.where(is_cls, p * two_t_m1 + one_m_t, 1.0)
    alpha_t = _ALPHA * two_t_m1 + one_m_t
    one_m_xt = 1.0 - x_t
    fl = -alpha_t * one_m_xt * one_m_xt * jnp.log(x_t + _EPS)
    if has_mask:
        fl = fl * m_ref[...].astype(jnp.float32)

    # ---- smooth L1 on cls-gated loc lanes (beta = 1.0, sum reduction) ----
    # Gate d once: off-loc d == 0 so sl1 == 0 with no trailing select.
    d = jnp.where(is_loc, cls_b * (p - t), 0.0)
    ad = jnp.abs(d)
    sl1 = jnp.where(ad < 1.0, 0.5 * d * d, ad - 0.5)

    # ---- BCE on cls-gated dir lane (torch clamps log at -100) ----
    # 0.0 neutral off-dir: dt == 0 and max(log(0), -100) = -100 is finite, so
    # bce == -(0*(-100) + 1*log(1)) == 0 exactly; no trailing select needed.
    dp = jnp.where(is_dir, p * cls_b, 0.0)
    dt = jnp.where(is_dir, t * cls_b, 0.0)
    log_p = jnp.maximum(jnp.log(dp), -100.0)
    log_1mp = jnp.maximum(jnp.log(1.0 - dp), -100.0)
    bce = -(dt * log_p + (1.0 - dt) * log_1mp)

    contrib = fl + sl1 + bce

    # ---- count of nonzero cls targets (pos_items), fused into the kernel ----
    pos = jnp.where(jnp.logical_and(is_cls, t != 0.0), 1.0, 0.0)

    if ragged:
        # Last tile overhangs the array: a single row_ok select on the two
        # accumulated quantities kills any garbage (incl. NaN) rows.
        rows_valid = rows_total - pl.program_id(0) * block_rows
        row_ok = lax.broadcasted_iota(jnp.int32, shape, 0) < rows_valid
        contrib = jnp.where(row_ok, contrib, 0.0)
        pos = jnp.where(row_ok, pos, 0.0)

    loss_row = jnp.sum(contrib, axis=0, keepdims=True)   # (1, 1024)
    pos_row = jnp.sum(pos, axis=0, keepdims=True)        # (1, 1024)
    # Single lane-dense store of the whole (1, 2048) slab.
    out_ref[...] = jnp.concatenate([loss_row, pos_row], axis=1)


@jax.jit
def custom_loss(preds, targets, mask=None):
    """Pallas implementation of CustomLoss.forward.

    Args:
      preds:   (B, H, W, 8) float, cls/dir channels are probabilities in (0,1)
      targets: (B, H, W, 8) float, cls channel in {0, 1}
      mask:    None, a scalar, or an array broadcastable to (B, H, W, 1)
    Returns:
      (total_loss, loc_loss, cls_loss) scalars, matching the torch module.
    """
    B, H, W, C = preds.shape
    assert C == NUM_CH
    n = B * H * W
    denom = jnp.float32(n)

    # ---- mask handling: specialize the (default) no-mask path ----
    scalar_mask = None
    mask_flat = None
    if mask is not None:
        m = jnp.asarray(mask)
        if m.ndim == 0:
            scalar_mask = m.astype(jnp.float32)     # fold into cls_sum later
        else:
            m = jnp.broadcast_to(m.astype(jnp.float32), (B, H, W, 1))
            mask_flat = jnp.broadcast_to(m, (B, H, W, NUM_CH)).reshape(-1)

    # ---- free reshape of the native channel-last buffer to lane-dense rows ----
    n8 = n * NUM_CH
    pad = (-n8) % _COLS
    p_flat = preds.reshape(-1)
    t_flat = targets.reshape(-1)
    if pad:  # rare: only when B*H*W is not a multiple of 128 (zeros contribute 0)
        p_flat = jnp.pad(p_flat, (0, pad))
        t_flat = jnp.pad(t_flat, (0, pad))
        if mask_flat is not None:
            mask_flat = jnp.pad(mask_flat, (0, pad))
    rows = (n8 + pad) // _COLS
    p2 = p_flat.reshape(rows, _COLS)
    t2 = t_flat.reshape(rows, _COLS)

    # Block-row choice: big blocks (amortize per-step overhead) but always at
    # least _MIN_TILES tiles when possible (v7x dual-TensorCore split).
    if rows < 2 * 8:
        block_rows = rows                              # single full-extent tile
    else:
        block_rows = min(_MAX_BLOCK_ROWS, (pl.cdiv(rows, _MIN_TILES) // 8) * 8)
    num_tiles = pl.cdiv(rows, block_rows)
    ragged = (rows % block_rows) != 0
    has_mask = mask_flat is not None

    kernel = functools.partial(
        _loss_tile_kernel,
        has_mask=has_mask,
        rows_total=rows,
        block_rows=block_rows,
        ragged=ragged,
    )

    in_specs = [
        pl.BlockSpec((block_rows, _COLS), lambda i: (i, 0)),
        pl.BlockSpec((block_rows, _COLS), lambda i: (i, 0)),
    ]
    args = [p2, t2]
    if has_mask:
        in_specs.append(pl.BlockSpec((block_rows, _COLS), lambda i: (i, 0)))
        args.append(mask_flat.reshape(rows, _COLS))

    elems = rows * _COLS
    bytes_in = sum(int(a.size) * a.dtype.itemsize for a in args)
    cost = pl.CostEstimate(
        flops=int(55 * elems),
        transcendentals=int(3 * elems),
        bytes_accessed=int(bytes_in + num_tiles * 2 * _COLS * 4),
    )

    parts = pl.pallas_call(
        kernel,
        out_shape=jax.ShapeDtypeStruct((num_tiles, 1, 2 * _COLS), jnp.float32),
        grid_spec=pltpu.PrefetchScalarGridSpec(
            num_scalar_prefetch=0,
            grid=(num_tiles,),
            in_specs=in_specs,
            out_specs=pl.BlockSpec((None, 1, 2 * _COLS), lambda i: (i, 0, 0)),
        ),
        compiler_params=pltpu.CompilerParams(
            dimension_semantics=("parallel",),
            vmem_limit_bytes=48 * 1024 * 1024),
        cost_estimate=cost,
    )(*args)

    # ---- tiny cross-tile / cross-lane reductions (negligible XLA work) ----
    per_lane = jnp.sum(parts, axis=(0, 1))                              # (2048,)
    loss_lanes = per_lane[:_COLS]
    per_ch = loss_lanes.reshape(_COLS // NUM_CH, NUM_CH).sum(axis=0)    # (8,)
    cls_sum = per_ch[0]
    loc_sum = jnp.sum(per_ch[1:1 + BOX_CODE_LEN])
    dir_sum = per_ch[NUM_CH - 1]
    pos_items = jnp.sum(per_lane[_COLS:])

    if scalar_mask is not None:
        cls_sum = cls_sum * scalar_mask

    cls_loss = cls_sum / denom
    loc_loss = jnp.where(pos_items > 0, loc_sum / denom, jnp.float32(0.0))
    dir_loss = dir_sum / denom

    alpha, beta, gamma = 1.0, 1.0, 0.1
    total = alpha * cls_loss + beta * loc_loss
    if ESTIMATE_DIR:
        total = total + gamma * dir_loss
    return total, loc_loss, cls_loss


def _reference(preds, targets, mask=None):
    """Pure-JAX reference mirroring the torch module (for verification)."""
    preds = preds.astype(jnp.float32)
    targets = targets.astype(jnp.float32)
    B, H, W, _ = preds.shape
    denom = B * H * W
    cls_p, cls_t = preds[..., :1], targets[..., :1]
    loc_p = preds[..., 1:1 + BOX_CODE_LEN]
    loc_t = targets[..., 1:1 + BOX_CODE_LEN]
    x_t = cls_p * (2 * cls_t - 1) + (1 - cls_t)
    a_t = _ALPHA * (2 * cls_t - 1) + (1 - cls_t)
    fl = -a_t * (1 - x_t) ** 2 * jnp.log(x_t + _EPS)
    if mask is not None:
        fl = fl * jnp.asarray(mask, jnp.float32)
    cls_loss = jnp.sum(fl) / denom
    d = cls_t * loc_p - cls_t * loc_t
    ad = jnp.abs(d)
    loc_loss = jnp.sum(jnp.where(ad < 1, 0.5 * d * d, ad - 0.5)) / denom
    loc_loss = jnp.where(jnp.sum(cls_t != 0) > 0, loc_loss, 0.0)
    dp = preds[..., -1:] * cls_t
    dt = targets[..., -1:] * cls_t
    bce = -(dt * jnp.maximum(jnp.log(dp), -100.0)
            + (1 - dt) * jnp.maximum(jnp.log(1 - dp), -100.0))
    dir_loss = jnp.sum(bce) / denom
    return cls_loss + loc_loss + 0.1 * dir_loss, loc_loss, cls_loss


def _make_inputs(key, B, H, W):
    kp, kc, kl, kd = jax.random.split(key, 4)
    # predictions: sigmoided logits so cls/dir channels are valid probabilities
    preds = jax.nn.sigmoid(jax.random.normal(kp, (B, H, W, NUM_CH), jnp.float32))
    cls_t = (jax.random.uniform(kc, (B, H, W, 1)) > 0.8).astype(jnp.float32)
    loc_t = jax.random.normal(kl, (B, H, W, BOX_CODE_LEN), jnp.float32)
    dir_t = (jax.random.uniform(kd, (B, H, W, 1)) > 0.5).astype(jnp.float32)
    targets = jnp.concatenate([cls_t, loc_t, dir_t], axis=-1)
    return preds, targets


if __name__ == "__main__":
    key = jax.random.PRNGKey(0)

    def check(idx, preds, targets, mask=None, tol=1e-4):
        if mask is None:
            total, loc_l, cls_l = custom_loss(preds, targets)
        else:
            total, loc_l, cls_l = custom_loss(preds, targets, mask)
        jax.block_until_ready(total)
        r_total, r_loc, r_cls = _reference(preds, targets, mask)
        for name, got, ref in (("total", total, r_total),
                               ("loc", loc_l, r_loc),
                               ("cls", cls_l, r_cls)):
            assert jnp.allclose(got, ref, rtol=tol, atol=tol), (idx, name, got, ref)

    # 1) aligned single tile
    key, sub = jax.random.split(key)
    p1, t1 = _make_inputs(sub, 2, 16, 16)
    check(1, p1, t1)

    # 2) unaligned shape (pad path); 3) same shape with a scalar mask
    key, sub = jax.random.split(key)
    p2, t2 = _make_inputs(sub, 1, 5, 7)
    check(2, p2, t2)
    check(3, p2, t2, mask=2.0)

    # 4) multi-tile ragged grid
    key, sub = jax.random.split(key)
    p3, t3 = _make_inputs(sub, 1, 160, 208)
    check(4, p3, t3)

    # 5) bf16 inputs: native-dtype DMA + in-kernel cast
    check(5, p3.astype(jnp.bfloat16), t3.astype(jnp.bfloat16), tol=1e-3)

    # 6) per-pixel array mask (rare extra-input kernel variant)
    key, sub = jax.random.split(key)
    m = (jax.random.uniform(sub, (2, 16, 16, 1)) > 0.5).astype(jnp.float32)
    check(6, p1, t1, mask=m)

    print("KERNEL_OK")
</pallas_src>

<mosaic_0001>
module attributes {stable_mosaic.version = 11 : i64} {
  func.func @_loss_tile_kernel(%arg0: i32, %arg1: memref<4x1024xf32, #tpu.memory_space<vmem>>, %arg2: memref<4x1024xf32, #tpu.memory_space<vmem>>, %arg3: memref<1x1x2048xf32, #tpu.memory_space<vmem>>) attributes {dimension_semantics = [#tpu.dimension_semantics<parallel>], iteration_bounds = array<i64: 1>, scalar_prefetch = 0 : i64, scratch_operands = 0 : i64, tpu.core_type = #tpu.core_type<tc>, window_params = [{transform_indices = @transform_0, window_bounds = array<i64: 4, 1024>}, {transform_indices = @transform_1, window_bounds = array<i64: 4, 1024>}, {transform_indices = @transform_2, window_bounds = array<i64: 1, 1, 2048>}]} {
    %c0 = arith.constant 0 : index
    %c0_0 = arith.constant 0 : index
    %0 = vector.load %arg1[%c0, %c0_0] : memref<4x1024xf32, #tpu.memory_space<vmem>>, vector<4x1024xf32>
    %c0_1 = arith.constant 0 : index
    %c0_2 = arith.constant 0 : index
    %1 = vector.load %arg2[%c0_1, %c0_2] : memref<4x1024xf32, #tpu.memory_space<vmem>>, vector<4x1024xf32>
    %2 = tpu.iota {dimensions = array<i32: 1>} : vector<4x1024xi32>
    %c7_i32 = arith.constant 7 : i32
    %3 = vector.broadcast %c7_i32 : i32 to vector<4x1024xi32>
    %4 = arith.andi %2, %3 : vector<4x1024xi32>
    %c0_i32 = arith.constant 0 : i32
    %5 = vector.broadcast %c0_i32 : i32 to vector<4x1024xi32>
    %6 = arith.cmpi eq, %4, %5 : vector<4x1024xi32>
    %c0_i32_3 = arith.constant 0 : i32
    %7 = vector.broadcast %c0_i32_3 : i32 to vector<4x1024xi32>
    %8 = arith.cmpi sgt, %4, %7 : vector<4x1024xi32>
    %c7_i32_4 = arith.constant 7 : i32
    %9 = vector.broadcast %c7_i32_4 : i32 to vector<4x1024xi32>
    %10 = arith.cmpi slt, %4, %9 : vector<4x1024xi32>
    %11 = arith.andi %8, %10 : vector<4x1024xi1>
    %c7_i32_5 = arith.constant 7 : i32
    %12 = vector.broadcast %c7_i32_5 : i32 to vector<4x1024xi32>
    %13 = arith.cmpi eq, %4, %12 : vector<4x1024xi32>
    %cst = arith.constant 0.000000e+00 : f32
    %14 = vector.broadcast %cst : f32 to vector<4x1024xf32>
    %15 = arith.select %6, %1, %14 : vector<4x1024xi1>, vector<4x1024xf32>
    %c1_i32 = arith.constant 1 : i32
    %16 = tpu.dynamic_rotate %15 by %c1_i32 dim 1 : vector<4x1024xf32>, i32 -> vector<4x1024xf32>
    %17 = arith.addf %15, %16 : vector<4x1024xf32>
    %c2_i32 = arith.constant 2 : i32
    %18 = tpu.dynamic_rotate %17 by %c2_i32 dim 1 : vector<4x1024xf32>, i32 -> vector<4x1024xf32>
    %19 = arith.addf %17, %18 : vector<4x1024xf32>
    %c4_i32 = arith.constant 4 : i32
    %20 = tpu.dynamic_rotate %19 by %c4_i32 dim 1 : vector<4x1024xf32>, i32 -> vector<4x1024xf32>
    %21 = arith.addf %19, %20 : vector<4x1024xf32>
    %cst_6 = arith.constant 2.000000e+00 : f32
    %22 = vector.broadcast %cst_6 : f32 to vector<4x1024xf32>
    %23 = arith.mulf %22, %1 : vector<4x1024xf32>
    %cst_7 = arith.constant 1.000000e+00 : f32
    %24 = vector.broadcast %cst_7 : f32 to vector<4x1024xf32>
    %25 = arith.subf %23, %24 : vector<4x1024xf32>
    %cst_8 = arith.constant 1.000000e+00 : f32
    %26 = vector.broadcast %cst_8 : f32 to vector<4x1024xf32>
    %27 = arith.subf %26, %1 : vector<4x1024xf32>
    %28 = arith.mulf %0, %25 : vector<4x1024xf32>
    %29 = arith.addf %28, %27 : vector<4x1024xf32>
    %cst_9 = arith.constant 1.000000e+00 : f32
    %30 = vector.broadcast %cst_9 : f32 to vector<4x1024xf32>
    %31 = arith.select %6, %29, %30 : vector<4x1024xi1>, vector<4x1024xf32>
    %cst_10 = arith.constant 2.500000e-01 : f32
    %32 = vector.broadcast %cst_10 : f32 to vector<4x1024xf32>
    %33 = arith.mulf %32, %25 : vector<4x1024xf32>
    %34 = arith.addf %33, %27 : vector<4x1024xf32>
    %cst_11 = arith.constant 1.000000e+00 : f32
    %35 = vector.broadcast %cst_11 : f32 to vector<4x1024xf32>
    %36 = arith.subf %35, %31 : vector<4x1024xf32>
    %cst_12 = arith.constant 0.000000e+00 : f32
    %37 = vector.broadcast %cst_12 : f32 to vector<4x1024xf32>
    %38 = arith.subf %37, %34 : vector<4x1024xf32>
    %39 = arith.mulf %38, %36 : vector<4x1024xf32>
    %40 = arith.mulf %39, %36 : vector<4x1024xf32>
    %cst_13 = arith.constant 9.99999974E-6 : f32
    %41 = vector.broadcast %cst_13 : f32 to vector<4x1024xf32>
    %42 = arith.addf %31, %41 : vector<4x1024xf32>
    %43 = math.log %42 : vector<4x1024xf32>
    %44 = arith.mulf %40, %43 : vector<4x1024xf32>
    %45 = arith.subf %0, %1 : vector<4x1024xf32>
    %46 = arith.mulf %21, %45 : vector<4x1024xf32>
    %cst_14 = arith.constant 0.000000e+00 : f32
    %47 = vector.broadcast %cst_14 : f32 to vector<4x1024xf32>
    %48 = arith.select %11, %46, %47 : vector<4x1024xi1>, vector<4x1024xf32>
    %49 = math.absf %48 : vector<4x1024xf32>
    %cst_15 = arith.constant 1.000000e+00 : f32
    %50 = vector.broadcast %cst_15 : f32 to vector<4x1024xf32>
    %51 = arith.cmpf olt, %49, %50 : vector<4x1024xf32>
    %cst_16 = arith.constant 5.000000e-01 : f32
    %52 = vector.broadcast %cst_16 : f32 to vector<4x1024xf32>
    %53 = arith.mulf %52, %48 : vector<4x1024xf32>
    %54 = arith.mulf %53, %48 : vector<4x1024xf32>
    %cst_17 = arith.constant 5.000000e-01 : f32
    %55 = vector.broadcast %cst_17 : f32 to vector<4x1024xf32>
    %56 = arith.subf %49, %55 : vector<4x1024xf32>
    %57 = arith.select %51, %54, %56 : vector<4x1024xi1>, vector<4x1024xf32>
    %58 = arith.mulf %0, %21 : vector<4x1024xf32>
    %cst_18 = arith.constant 0.000000e+00 : f32
    %59 = vector.broadcast %cst_18 : f32 to vector<4x1024xf32>
    %60 = arith.select %13, %58, %59 : vector<4x1024xi1>, vector<4x1024xf32>
    %61 = arith.mulf %1, %21 : vector<4x1024xf32>
    %cst_19 = arith.constant 0.000000e+00 : f32
    %62 = vector.broadcast %cst_19 : f32 to vector<4x1024xf32>
    %63 = arith.select %13, %61, %62 : vector<4x1024xi1>, vector<4x1024xf32>
    %64 = math.log %60 : vector<4x1024xf32>
    %cst_20 = arith.constant -1.000000e+02 : f32
    %65 = vector.broadcast %cst_20 : f32 to vector<4x1024xf32>
    %66 = arith.maximumf %64, %65 : vector<4x1024xf32>
    %cst_21 = arith.constant 1.000000e+00 : f32
    %67 = vector.broadcast %cst_21 : f32 to vector<4x1024xf32>
    %68 = arith.subf %67, %60 : vector<4x1024xf32>
    %69 = math.log %68 : vector<4x1024xf32>
    %cst_22 = arith.constant -1.000000e+02 : f32
    %70 = vector.broadcast %cst_22 : f32 to vector<4x1024xf32>
    %71 = arith.maximumf %69, %70 : vector<4x1024xf32>
    %72 = arith.mulf %63, %66 : vector<4x1024xf32>
    %cst_23 = arith.constant 1.000000e+00 : f32
    %73 = vector.broadcast %cst_23 : f32 to vector<4x1024xf32>
    %74 = arith.subf %73, %63 : vector<4x1024xf32>
    %75 = arith.mulf %74, %71 : vector<4x1024xf32>
    %76 = arith.addf %72, %75 : vector<4x1024xf32>
    %cst_24 = arith.constant 0.000000e+00 : f32
    %77 = vector.broadcast %cst_24 : f32 to vector<4x1024xf32>
    %78 = arith.subf %77, %76 : vector<4x1024xf32>
    %79 = arith.addf %44, %57 : vector<4x1024xf32>
    %80 = arith.addf %79, %78 : vector<4x1024xf32>
    %cst_25 = arith.constant 0.000000e+00 : f32
    %81 = vector.broadcast %cst_25 : f32 to vector<4x1024xf32>
    %82 = arith.cmpf one, %1, %81 : vector<4x1024xf32>
    %83 = arith.andi %6, %82 : vector<4x1024xi1>
    %cst_26 = arith.constant 1.000000e+00 : f32
    %cst_27 = arith.constant 0.000000e+00 : f32
    %84 = vector.broadcast %cst_26 : f32 to vector<4x1024xf32>
    %85 = vector.broadcast %cst_27 : f32 to vector<4x1024xf32>
    %86 = arith.select %83, %84, %85 : vector<4x1024xi1>, vector<4x1024xf32>
    %cst_28 = arith.constant dense<0.000000e+00> : vector<1024xf32>
    %87 = vector.multi_reduction <add>, %80, %cst_28 [0] : vector<4x1024xf32> to vector<1024xf32>
    %88 = vector.shape_cast %87 : vector<1024xf32> to vector<1x1024xf32>
    %cst_29 = arith.constant dense<0.000000e+00> : vector<1024xf32>
    %89 = vector.multi_reduction <add>, %86, %cst_29 [0] : vector<4x1024xf32> to vector<1024xf32>
    %90 = vector.shape_cast %89 : vector<1024xf32> to vector<1x1024xf32>
    %91 = tpu.concatenate %88, %90 in 1 : vector<1x1024xf32>, vector<1x1024xf32> -> vector<1x2048xf32>
    %c0_30 = arith.constant 0 : index
    %c0_31 = arith.constant 0 : index
    %c0_32 = arith.constant 0 : index
    %92 = vector.load %arg3[%c0_30, %c0_31, %c0_32] : memref<1x1x2048xf32, #tpu.memory_space<vmem>>, vector<1x1x2048xf32>
    %93 = vector.shape_cast %92 : vector<1x1x2048xf32> to vector<1x2048xf32>
    %94 = vector.shape_cast %91 : vector<1x2048xf32> to vector<1x1x2048xf32>
    tpu.vector_store %arg3[%c0_30, %c0_31, %c0_32], %94 {strides = array<i32>} : memref<1x1x2048xf32, #tpu.memory_space<vmem>>, vector<1x1x2048xf32>,
    return
  }
  func.func @transform_0(%arg0: i32) -> (i32, i32) {
    %c0_i32 = arith.constant 0 : i32
    %c0_i32_0 = arith.constant 0 : i32
    return %arg0, %c0_i32 : i32, i32
  }
  func.func @transform_1(%arg0: i32) -> (i32, i32) {
    %c0_i32 = arith.constant 0 : i32
    %c0_i32_0 = arith.constant 0 : i32
    return %arg0, %c0_i32 : i32, i32
  }
  func.func @transform_2(%arg0: i32) -> (i32, i32, i32) {
    %c0_i32 = arith.constant 0 : i32
    %c0_i32_0 = arith.constant 0 : i32
    %c0_i32_1 = arith.constant 0 : i32
    return %arg0, %c0_i32, %c0_i32_0 : i32, i32, i32
  }
}

</mosaic_0001>

<bundles_post_ra>
// kernel: custom_loss.1
= control target key start
LH: loop header
LB: loop body
LE: loop exit
PB: predicated region body
PF: predicated region fallthrough
CT: control target
= control target key end

     0   :  { %v19_v0 = vlaneseq  ;;  %v952_v11 = vmov 0   ;;  %vm647_vm3 = vcmask 1043456   ;;  %v953_v17 = vmov 0.0   ;;  %s954_s15 = smov 1   ;;  %s956_s26 = smov 2   ;;  %s1522_s1 = inlined_call_operand.vmem [shape: f32[4,1024], index: 1, kind: input, shape index: {}]   ;;  %s1523_s0 = inlined_call_operand.vmem [shape: f32[4,1024], index: 0, kind: input, shape index: {}]   ;;  %s1524_s2 = inlined_call_operand.vmem [shape: f32[1,1,2048], index: 2, kind: output, shape index: {}]  }
   0x1   :  { %v976_v1 = vld [vmem:[%s1522_s1] sm:$0xff]  ;;  %v985_v4 = vld [vmem:[%s1522_s1 + $0x8] sm:$0xff]  ;;  %s957_s27 = smov 4  }
   0x2   :  { %v979_v2 = vand.u32 127, %v19_v0  ;;  %v195_v3 = vmul.f32 2.0, %v976_v1  ;;  %vm603_vm0 = vcmp.ne.f32.partialorder %v976_v1, 0.0  ;;  %v991_v5 = vld [vmem:[%s1523_s0] sm:$0xff]  ;;  %v196_v6 = vmul.f32 2.0, %v985_v4  ;;  %v1027_v23 = vld [vmem:[%s1523_s0 + $0x8] sm:$0xff] }
   0x3   :  { %v203_v9 = vsub.f32 1.0, %v976_v1  ;;  %v607_v12 = vsel %vm603_vm0, 1, %v952_v11  ;;  %vm604_vm5 = vcmp.ne.f32.partialorder %v985_v4, 0.0  ;;  %v204_v26 = vsub.f32 1.0, %v985_v4 }
   0x4   :  { %v995_v7 = vand.u32 7, %v979_v2  ;;  %v882_v8 = vadd.f32 -1.0, %v195_v3  ;;  %v22_v10 = vadd.s32 256, %v979_v2  ;;  %v883_v16 = vadd.f32 -1.0, %v196_v6  ;;  %v1066_v6 = vld [vmem:[%s1522_s1 + $0x10] sm:$0xff] }
   0x5   :  { %v611_v20 = vcombine.high %v607_v12, %v607_v12  ;;  %v608_v29 = vsel %vm604_vm5, 1, %v952_v11  ;;  %v21_v31 = vadd.s32 128, %v979_v2  ;;  %v80_v34 = vcombine.high %v976_v1, %v976_v1 }
   0x6   :  { %vm36_vm1 = vcmp.eq.s32.totalorder %v995_v7, 0  ;;  %v207_v13 = vmul.f32 %v882_v8, %v991_v5  ;;  %v1002_v14 = vand.u32 7, %v22_v10  ;;  %v208_v30 = vmul.f32 %v883_v16, %v1027_v23 }
   0x7   :  { %v1007_v15 = vsel %vm36_vm1, %v976_v1, 0.0  ;;  %vm619_vm2 = vmand %vm36_vm1, %vm603_vm0  ;;  %v235_v36 = vmul.f32 0.25, %v882_v8  ;;  %v1041_v38 = vand.u32 7, %v21_v31  ;;  %vm615_vm7 = vcmp.ne.s32.totalorder %v611_v20, 0 }
   0x8   :  { %v627_v18 = vsel %vm619_vm2, 1.0, %v953_v17  ;;  %96 = vrot.lane.b32.xlu0 %v1007_v15, %s954_s15  ;;  %v211_v19 = vadd.f32 %v207_v13, %v203_v9  ;;  %vm38_vm4 = vcmp.eq.s32.totalorder %v1002_v14, 0  ;;  %v212_v37 = vadd.f32 %v208_v30, %v204_v26 }
   0x9   :  { %v704_v21 = vsel %vm647_vm3, %v627_v18, 0.0  ;;  %v1020_v22 = vsel %vm38_vm4, %v985_v4, 0.0  ;;  %vm621_vm6 = vmand %vm38_vm4, %vm604_vm5  ;;  %v236_v40 = vmul.f32 0.25, %v883_v16  ;;  %v612_v41 = vcombine.high %v608_v29, %v608_v29 }
   0xa   :  { %v705_v24 = vrot.slane %v704_v21, 4  ;;  %v227_v25 = vsel %vm36_vm1, %v211_v19, 1.0  ;;  %v629_v27 = vsel %vm621_vm6, 1.0, %v953_v17  ;;  %100 = vrot.lane.b32.xlu1 %v1020_v22, %s954_s15  ;;  %v219_v35 = vcombine.high %v211_v19, %v211_v19 }
   0xb   :  { %v279_v32 = vadd.f32 1e-05, %v227_v25  ;;  %v718_v33 = vsel %vm647_vm3, %v629_v27, 0.0  ;;  %v243_v39 = vsub.f32 1.0, %v227_v25  ;;  %v23_v42 = vadd.s32 384, %v979_v2  ;;  %v1082_v25 = vld [vmem:[%s1523_s0 + $0x10] sm:$0xff] }
   0xc   :  { %v706_v28 = vadd.f32 %v705_v24, %v704_v21  ;;  %v719_v44 = vrot.slane %v718_v33, 4  ;;  %v229_v45 = vsel %vm38_vm4, %v212_v37, 1.0  ;;  %vm37_vm8 = vcmp.eq.s32.totalorder %v1041_v38, 0 }
   0xd   :  { %904 = vlog2.f32 %v279_v32  ;;  %v1047_v46 = vsel %vm37_vm8, %v80_v34, 0.0  ;;  %vm620_vm9 = vmand %vm37_vm8, %vm615_vm7  ;;  %v228_v47 = vsel %vm37_vm8, %v219_v35, 1.0  ;;  %v24_v48 = vadd.s32 512, %v979_v2 }
   0xe   :  { %v707_v43 = vrot.slane %v706_v28, 2  ;;  %v281_v49 = vadd.f32 1e-05, %v229_v45  ;;  %v628_v50 = vsel %vm620_vm9, 1.0, %v953_v17  ;;  %98 = vrot.lane.b32.xlu0 %v1047_v46, %s954_s15  ;;  %v244_v51 = vsub.f32 1.0, %v228_v47 }
   0xf   :  { %v81_v52 = vcombine.high %v985_v4, %v985_v4  ;;  %v711_v53 = vsel %vm647_vm3, %v628_v50, 0.0  ;;  %v280_v54 = vadd.f32 1e-05, %v228_v47  ;;  %v1056_v55 = vand.u32 7, %v23_v42 }
  0x10   :  { %vm616_vm10 = vcmp.ne.s32.totalorder %v612_v41, 0  ;;  %v239_v56 = vadd.f32 %v235_v36, %v203_v9  ;;  %v708_v57 = vadd.f32 %v707_v43, %v706_v28  ;;  %v720_v58 = vadd.f32 %v719_v44, %v718_v33 }
  0x11   :  { %v263_v59 = vcombine.low %v243_v39, %v244_v51  ;;  %906 = vlog2.f32 %v280_v54  ;;  %vm39_vm11 = vcmp.eq.s32.totalorder %v1056_v55, 0  ;;  %v220_v60 = vcombine.high %v212_v37, %v212_v37 }
  0x12   :  { %v1059_v61 = vand.u32 7, %v24_v48  ;;  %v245_v62 = vsub.f32 1.0, %v229_v45  ;;  %908 = vlog2.f32 %v281_v49  ;;  %v712_v63 = vrot.slane %v711_v53, 4  ;;  %vm622_vm12 = vmand %vm39_vm11, %vm616_vm10 }
  0x13   :  { %v1061_v3 = vsel %vm39_vm11, %v81_v52, 0.0  ;;  %v630_v8 = vsel %vm622_vm12, 1.0, %v953_v17  ;;  %v230_v9 = vsel %vm39_vm11, %v220_v60, 1.0  ;;  %v197_v10 = vmul.f32 2.0, %v1066_v6 }
  0x14   :  { %102 = vrot.lane.b32.xlu1 %v1061_v3, %s954_s15  ;;  %vm40_vm13 = vcmp.eq.s32.totalorder %v1059_v61, 0  ;;  %v251_v12 = vsub.f32 0.0, %v239_v56  ;;  %v240_v13 = vadd.f32 %v236_v40, %v204_v26  ;;  %v721_v16 = vrot.slane %v720_v58, 2 }
  0x15   :  { %v725_v18 = vsel %vm647_vm3, %v630_v8, 0.0  ;;  %v709_v19 = vrot.slane %v708_v57, 1  ;;  %v246_v20 = vsub.f32 1.0, %v230_v9  ;;  %v282_v21 = vadd.f32 1e-05, %v230_v9 }
  0x16   :  { %v1077_v24 = vsel %vm40_vm13, %v1066_v6, 0.0  ;;  %v713_v27 = vadd.f32 %v712_v63, %v711_v53  ;;  %v726_v28 = vrot.slane %v725_v18, 4  ;;  %v884_v29 = vadd.f32 -1.0, %v197_v10 }
  0x17   :  { %vm605_vm14 = vcmp.ne.f32.partialorder %v1066_v6, 0.0  ;;  %104 = vrot.lane.b32.xlu0 %v1077_v24, %s954_s15  ;;  %v905_v26 = vpop.eup %904  ;;  %v264_v30 = vcombine.low %v245_v62, %v246_v20  ;;  %910 = vlog2.f32 %v282_v21  ;;  %v205_v31 = vsub.f32 1.0, %v1066_v6 }
  0x18   :  { %vm623_vm15 = vmand %vm40_vm13, %vm605_vm14  ;;  %v25_v32 = vadd.s32 640, %v979_v2  ;;  %v252_v33 = vsub.f32 0.0, %v240_v13  ;;  %v271_v34 = vmul.f32 %v263_v59, %v251_v12  ;;  %v209_v35 = vmul.f32 %v884_v29, %v1082_v25 }
  0x19   :  { %v288_v37 = vmul.f32 0.6931472, %v905_v26  ;;  %v714_v39 = vrot.slane %v713_v27, 2  ;;  %v727_v40 = vadd.f32 %v726_v28, %v725_v18  ;;  %v631_v41 = vsel %vm623_vm15, 1.0, %v953_v17 }
  0x1a   :  { %v1094_v36 = vand.u32 7, %v25_v32  ;;  %v1097_v43 = vadd.f32 %v709_v19, %v708_v57  ;;  %v955_v44 = vmov 1966171168   ;;  %v1101_v47 = vadd.f32 %v721_v16, %v720_v58 }
  0x1b   :  { %v907_v42 = vpop.eup %906  ;;  %v1099_v45 = vunpack.c.l.s4 %v955_v44  ;;  %v213_v48 = vadd.f32 %v209_v35, %v205_v31  ;;  %v275_v50 = vmul.f32 %v271_v34, %v263_v59  ;;  %v272_v52 = vmul.f32 %v264_v30, %v252_v33 }
  0x1c   :  { %v909_v49 = vpop.eup %908  ;;  %v290_v51 = vmul.f32 0.6931472, %v907_v42  ;;  %vm41_vm0 = vcmp.eq.s32.totalorder %v1094_v36, 0  ;;  %v732_v53 = vsel %vm647_vm3, %v631_v41, 0.0  ;;  %v82_v56 = vcombine.high %v1066_v6, %v1066_v6 }
  0x1d   :  { %v231_v54 = vsel %vm40_vm13, %v213_v48, 1.0  ;;  %v609_v57 = vsel %vm605_vm14, 1, %v952_v11  ;;  %v1112_v58 = vadd.f32 %v714_v39, %v713_v27  ;;  %v728_v59 = vrot.slane %v727_v40, 2  ;;  %v1126_v27 = vld [vmem:[%s1522_s1 + $0x18] sm:$0xff] }
  0x1e   :  { %v311_v60 = vcombine.low %v288_v37, %v290_v51  ;;  %v237_v62 = vmul.f32 0.25, %v884_v29  ;;  %v292_v63 = vmul.f32 0.6931472, %v909_v49  ;;  %v283_v8 = vadd.f32 1e-05, %v231_v54  ;;  %v1141_v49 = vld [vmem:[%s1523_s0 + $0x18] sm:$0xff] }
  0x1f   :  { %v1116_v9 = vsel %vm41_vm0, %v82_v56, 0.0  ;;  %v613_v10 = vcombine.high %v609_v57, %v609_v57  ;;  %v733_v13 = vrot.slane %v732_v53, 4  ;;  %v221_v16 = vcombine.high %v213_v48, %v213_v48 }
  0x20   :  { %v1118_v12 = vmul.f32 %v311_v60, %v275_v50  ;;  %106 = vrot.lane.b32.xlu1 %v1116_v9, %s954_s15  ;;  %v26_v18 = vadd.s32 768, %v979_v2  ;;  %v276_v20 = vmul.f32 %v272_v52, %v264_v30  ;;  %v247_v21 = vsub.f32 1.0, %v231_v54 }
  0x21   :  { %v911_v19 = vpop.eup %910  ;;  %912 = vlog2.f32 %v283_v8  ;;  %vm617_vm1 = vcmp.ne.s32.totalorder %v613_v10, 0  ;;  %v232_v29 = vsel %vm41_vm0, %v221_v16, 1.0  ;;  %v198_v32 = vmul.f32 2.0, %v1126_v27 }
  0x22   :  { %v294_v28 = vmul.f32 0.6931472, %v911_v19  ;;  %vm624_vm2 = vmand %vm41_vm0, %vm617_vm1  ;;  %v1132_v26 = vand.u32 7, %v26_v18  ;;  %v241_v30 = vadd.f32 %v237_v62, %v205_v31  ;;  %v248_v34 = vsub.f32 1.0, %v232_v29 }
  0x23   :  { %v632_v33 = vsel %vm624_vm2, 1.0, %v953_v17  ;;  %v284_v35 = vadd.f32 1e-05, %v232_v29  ;;  %v729_v37 = vadd.f32 %v728_v59, %v727_v40  ;;  %v734_v42 = vadd.f32 %v733_v13, %v732_v53 }
  0x24   :  { %v312_v39 = vcombine.low %v292_v63, %v294_v28  ;;  %v739_v41 = vsel %vm647_vm3, %v632_v33, 0.0  ;;  %vm42_vm4 = vcmp.eq.s32.totalorder %v1132_v26, 0  ;;  %v265_v48 = vcombine.low %v247_v21, %v248_v34 }
  0x25   :  { %v740_v44 = vrot.slane %v739_v41, 4  ;;  %914 = vlog2.f32 %v284_v35  ;;  %v1148_v40 = vsel %vm42_vm4, %v1126_v27, 0.0  ;;  %v885_v50 = vadd.f32 -1.0, %v198_v32 }
  0x26   :  { %v1143_v31 = vmul.f32 %v312_v39, %v276_v20  ;;  %v206_v51 = vsub.f32 1.0, %v1126_v27  ;;  %v723_v52 = vrot.slane %v1101_v47, 1  ;;  %v253_v53 = vsub.f32 0.0, %v241_v30  ;;  %108 = vrot.lane.b32.xlu0 %v1148_v40, %s954_s15 }
  0x27   :  { %v741_v54 = vadd.f32 %v740_v44, %v739_v41  ;;  %vm606_vm5 = vcmp.ne.f32.partialorder %v1126_v27, 0.0  ;;  %v716_v56 = vrot.slane %v1112_v58, 1  ;;  %v730_v57 = vrot.slane %v729_v37, 1 }
  0x28   :  { %vm625_vm6 = vmand %vm42_vm4, %vm606_vm5  ;;  %v210_v60 = vmul.f32 %v885_v50, %v1141_v49  ;;  %v27_v59 = vadd.s32 896, %v979_v2  ;;  %v735_v62 = vrot.slane %v734_v42, 2  ;;  %v610_v10 = vsel %vm606_vm5, 1, %v952_v11 }
  0x29   :  { %v742_v63 = vrot.slane %v741_v54, 2  ;;  %v633_v8 = vsel %vm625_vm6, 1.0, %v953_v17  ;;  %v83_v19 = vcombine.high %v1126_v27, %v1126_v27  ;;  %v724_v21 = vadd.f32 %v723_v52, %v1101_v47 }
  0x2a   :  { %v746_v13 = vsel %vm647_vm3, %v633_v8, 0.0  ;;  %v214_v16 = vadd.f32 %v210_v60, %v206_v51  ;;  %v1163_v18 = vand.u32 7, %v27_v59  ;;  %v273_v28 = vmul.f32 %v265_v48, %v253_v53 }
  0x2b   :  { %v913_v20 = vpop.eup %912  ;;  %v747_v29 = vrot.slane %v746_v13, 4  ;;  %v614_v32 = vcombine.high %v610_v10, %v610_v10  ;;  %v717_v30 = vadd.f32 %v716_v56, %v1112_v58  ;;  %v731_v33 = vadd.f32 %v730_v57, %v729_v37 }
  0x2c   :  { %v233_v11 = vsel %vm42_vm4, %v214_v16, 1.0  ;;  %vm43_vm7 = vcmp.eq.s32.totalorder %v1163_v18, 0  ;;  %v736_v34 = vadd.f32 %v735_v62, %v734_v42  ;;  %v743_v35 = vadd.f32 %v742_v63, %v741_v54 }
  0x2d   :  { %v748_v39 = vadd.f32 %v747_v29, %v746_v13  ;;  %v285_v41 = vadd.f32 1e-05, %v233_v11  ;;  %v296_v44 = vmul.f32 0.6931472, %v913_v20  ;;  %v1174_v60 = vsel %vm43_vm7, %v83_v19, 0.0 }
  0x2e   :  { %vm618_vm8 = vcmp.ne.s32.totalorder %v614_v32, 0  ;;  %v222_v47 = vcombine.high %v214_v16, %v214_v16  ;;  %v277_v53 = vmul.f32 %v273_v28, %v265_v48  ;;  %v238_v58 = vmul.f32 0.25, %v885_v50  ;;  %110 = vrot.lane.b32.xlu1 %v1174_v60, %s954_s15 }
  0x2f   :  { %v915_v52 = vpop.eup %914  ;;  %v749_v37 = vrot.slane %v748_v39, 2  ;;  %v249_v56 = vsub.f32 1.0, %v233_v11  ;;  %vm626_vm9 = vmand %vm43_vm7, %vm618_vm8  ;;  %916 = vlog2.f32 %v285_v41  ;;  %v737_v59 = vrot.slane %v736_v34, 1 }
  0x30   :  { %v298_v42 = vmul.f32 0.6931472, %v915_v52  ;;  %v634_v54 = vsel %vm626_vm9, 1.0, %v953_v17  ;;  %v234_v57 = vsel %vm43_vm7, %v222_v47, 1.0  ;;  %v744_v62 = vrot.slane %v743_v35, 1 }
  0x31   :  { %v753_v48 = vsel %vm647_vm3, %v634_v54, 0.0  ;;  %v250_v50 = vsub.f32 1.0, %v234_v57  ;;  %v750_v8 = vadd.f32 %v749_v37, %v748_v39  ;;  %v286_v13 = vadd.f32 1e-05, %v234_v57 }
  0x32   :  { %v313_v63 = vcombine.low %v296_v44, %v298_v42  ;;  %v754_v10 = vrot.slane %v753_v48, 4  ;;  %v782_v16 = vunpack.c.0.s8 %v1099_v45  ;;  %v784_v19 = vshrl.u32 %v19_v0, 7 }
  0x33   :  { %v242_v20 = vadd.f32 %v238_v58, %v206_v51  ;;  %v266_v28 = vcombine.low %v249_v56, %v250_v50  ;;  %918 = vlog2.f32 %v286_v13  ;;  %v825_v32 = vcombine.low %v1097_v43, %v717_v30 }
  0x34   :  { %v1186_v29 = vmul.f32 %v313_v63, %v277_v53  ;;  %v755_v17 = vadd.f32 %v754_v10, %v753_v48  ;;  %v826_v11 = vcombine.low %v724_v21, %v731_v33  ;;  %v738_v41 = vadd.f32 %v737_v59, %v736_v34 }
  0x35   :  { %v745_v47 = vadd.f32 %v744_v62, %v743_v35  ;;  %v751_v52 = vrot.slane %v750_v8, 1  ;;  %v1189_v39 = vsub.s32 %v782_v16, %v784_v19  ;;  %v254_v37 = vsub.f32 0.0, %v242_v20 }
  0x36   :  { %v756_v44 = vrot.slane %v755_v17, 2  ;;  %vm112_vm10 = vcmp.lt.s32.totalorder %v979_v2, 1  ;;  %vm145_vm11 = vcmp.lt.s32.totalorder %v979_v2, 2  ;;  %vm178_vm12 = vcmp.lt.s32.totalorder %v979_v2, 4 }
  0x37   :  { %v835_v45 = vrot.slane %v825_v32, %v1189_v39  ;;  %v842_v51 = vrot.slane %v826_v11, %v1189_v39  ;;  %v827_v53 = vcombine.low %v738_v41, %v745_v47  ;;  %v752_v58 = vadd.f32 %v751_v52, %v750_v8 }
  0x38   :  { %v757_v42 = vadd.f32 %v756_v44, %v755_v17  ;;  %v274_v54 = vmul.f32 %v266_v28, %v254_v37  ;;  %vm70_vm13 = vcmp.eq.s32.totalorder %v1002_v14, 7  ;;  %vm46_vm14 = vcmp.gt.s32.totalorder %v1002_v14, 0 }
  0x39   :  { %v917_v0 = vpop.eup %916  ;;  %v857_v30 = vcombine.low %v835_v45, %v842_v51  ;;  %v849_v33 = vrot.slane %v827_v53, %v1189_v39  ;;  %vm54_vm15 = vcmp.lt.s32.totalorder %v1002_v14, 7  ;;  %vm71_vm0 = vcmp.eq.s32.totalorder %v1056_v55, 7 }
  0x3a   :  { %v758_v56 = vrot.slane %v757_v42, 1  ;;  %v300_v43 = vmul.f32 0.6931472, %v917_v0  ;;  %v278_v35 = vmul.f32 %v274_v54, %v266_v28  ;;  %vm47_vm1 = vcmp.gt.s32.totalorder %v1056_v55, 0  ;;  %vm62_vm4 = vmand %vm46_vm14, %vm54_vm15 }
  0x3b   :  { %v865_v50 = vrot.slane %v857_v30, %v1189_v39  ;;  %vm55_vm2 = vcmp.lt.s32.totalorder %v1056_v55, 7  ;;  %vm45_vm6 = vcmp.gt.s32.totalorder %v1041_v38, 0  ;;  %vm53_vm7 = vcmp.lt.s32.totalorder %v1041_v38, 7 }
  0x3c   :  { %v759_v57 = vadd.f32 %v758_v56, %v757_v42  ;;  %vm63_vm5 = vmand %vm47_vm1, %vm55_vm2  ;;  %vm72_vm9 = vcmp.eq.s32.totalorder %v1059_v61, 7  ;;  %vm73_vm14 = vcmp.eq.s32.totalorder %v1094_v36, 7  ;;  %vm68_vm15 = vcmp.eq.s32.totalorder %v995_v7, 7 }
  0x3d   :  { %v919_v21 = vpop.eup %918  ;;  %vm61_vm8 = vmand %vm45_vm6, %vm53_vm7  ;;  %vm49_vm1 = vcmp.gt.s32.totalorder %v1094_v36, 0  ;;  %vm57_vm2 = vcmp.lt.s32.totalorder %v1094_v36, 7  ;;  %vm69_vm6 = vcmp.eq.s32.totalorder %v1041_v38, 7  ;;  %vm44_vm7 = vcmp.gt.s32.totalorder %v995_v7, 0 }
  0x3e   :  { %v828_v34 = vcombine.low %v752_v58, %v759_v57  ;;  %v302_v59 = vmul.f32 0.6931472, %v919_v21 }
  0x40   :  { %v856_v62 = vrot.slane %v828_v34, %v1189_v39  ;;  %v314_v48 = vcombine.low %v300_v43, %v302_v59 }
  0x42   :  { %v858_v63 = vcombine.low %v849_v33, %v856_v62  ;;  %v1196_v10 = vmul.f32 %v314_v48, %v278_v35 }
  0x44   :  { %v872_v8 = vrot.slane %v858_v63, %v1189_v39 }
  0x46   :  { %v873_v13 = vcombine.low %v865_v50, %v872_v8 }
  0x48   :  { %877 = vst [vmem:[%s1524_s2 + $0x8] sm:$0xff] %v873_v13 }
  0x7a   :  { %v97_v16 = vpop.permute.xlu0 %96 }
  0x7c   :  { %v101_v19 = vpop.permute.xlu1 %100 }
  0x80   :  { %v99_v20 = vpop.permute.xlu0 %98 }
  0x81   :  { %v119_v28 = vsel %vm112_vm10, %v97_v16, %v99_v20  ;;  %v118_v53 = vsel %vm112_vm10, %v99_v20, %v101_v19 }
  0x82   :  { %v122_v17 = vadd.f32 %v119_v28, %v1047_v46 }
  0x84   :  { %131 = vrot.lane.b32.xlu1 %v122_v17, %s956_s26 }
  0x86   :  { %v103_v32 = vpop.permute.xlu1 %102 }
  0x87   :  { %v117_v11 = vsel %vm112_vm10, %v101_v19, %v103_v32 }
  0x88   :  { %v124_v41 = vadd.f32 %v117_v11, %v1061_v3 }
  0x89   :  { %v105_v47 = vpop.permute.xlu0 %104 }
  0x8a   :  { %135 = vrot.lane.b32.xlu1 %v124_v41, %s956_s26  ;;  %v116_v58 = vsel %vm112_vm10, %v103_v32, %v105_v47 }
  0x8b   :  { %v125_v56 = vadd.f32 %v116_v58, %v1077_v24 }
  0x92   :  { %v107_v52 = vpop.permute.xlu1 %106 }
  0x93   :  { %v115_v44 = vsel %vm112_vm10, %v105_v47, %v107_v52 }
  0x94   :  { %v126_v37 = vadd.f32 %v115_v44, %v1116_v9  ;;  %v123_v9 = vadd.f32 %v118_v53, %v1020_v22 }
  0x96   :  { %139 = vrot.lane.b32.xlu1 %v126_v37, %s956_s26 }
  0x98   :  { %v109_v42 = vpop.permute.xlu0 %108 }
  0x99   :  { %v114_v54 = vsel %vm112_vm10, %v107_v52, %v109_v42 }
  0xa0   :  { %v111_v45 = vpop.permute.xlu1 %110 }
  0xa1   :  { %v113_v46 = vsel %vm112_vm10, %v109_v42, %v111_v45  ;;  %v120_v0 = vsel %vm112_vm10, %v111_v45, %v97_v16  ;;  %vm48_vm10 = vcmp.gt.s32.totalorder %v1059_v61, 0 }
  0xa2   :  { %v121_v51 = vadd.f32 %v120_v0, %v1007_v15  ;;  %v128_v3 = vadd.f32 %v113_v46, %v1174_v60  ;;  %v127_v15 = vadd.f32 %v114_v54, %v1148_v40  ;;  %v324_v46 = vsub.f32 %v1027_v23, %v985_v4 }
  0xa4   :  { %129 = vrot.lane.b32.xlu0 %v121_v51, %s956_s26  ;;  %143 = vrot.lane.b32.xlu1 %v128_v3, %s956_s26  ;;  %v332_v53 = vcombine.high %v324_v46, %v324_v46 }
  0xa8   :  { %133 = vrot.lane.b32.xlu0 %v123_v9, %s956_s26 }
  0xac   :  { %137 = vrot.lane.b32.xlu0 %v125_v56, %s956_s26 }
  0xb0   :  { %141 = vrot.lane.b32.xlu0 %v127_v15, %s956_s26 }
  0xf6   :  { %v132_v60 = vpop.permute.xlu1 %131 }
  0xfc   :  { %v136_v57 = vpop.permute.xlu1 %135 }
 0x108   :  { %v140_v43 = vpop.permute.xlu1 %139 }
 0x116   :  { %v130_v21 = vpop.permute.xlu0 %129  ;;  %v144_v22 = vpop.permute.xlu1 %143 }
 0x117   :  { %v152_v30 = vsel %vm145_vm11, %v130_v21, %v132_v60  ;;  %v153_v24 = vsel %vm145_vm11, %v144_v22, %v130_v21 }
 0x118   :  { %v155_v33 = vadd.f32 %v152_v30, %v122_v17  ;;  %v1232_v34 = vadd.f32 %v153_v24, %v121_v51  ;;  %v1262_v51 = vsub.f32 %v991_v5, %v976_v1 }
 0x11a   :  { %164 = vrot.lane.b32.xlu1 %v155_v33, %s957_s27  ;;  %v134_v40 = vpop.permute.xlu0 %133  ;;  %162 = vrot.lane.b32.xlu0 %v1232_v34, %s957_s27 }
 0x11b   :  { %v150_v35 = vsel %vm145_vm11, %v134_v40, %v136_v57  ;;  %v151_v59 = vsel %vm145_vm11, %v132_v60, %v134_v40 }
 0x11c   :  { %v156_v62 = vadd.f32 %v151_v59, %v123_v9  ;;  %v157_v48 = vadd.f32 %v150_v35, %v124_v41 }
 0x11e   :  { %168 = vrot.lane.b32.xlu1 %v157_v48, %s957_s27  ;;  %v138_v50 = vpop.permute.xlu0 %137  ;;  %166 = vrot.lane.b32.xlu0 %v156_v62, %s957_s27 }
 0x11f   :  { %v148_v63 = vsel %vm145_vm11, %v138_v50, %v140_v43  ;;  %v149_v8 = vsel %vm145_vm11, %v136_v57, %v138_v50 }
 0x120   :  { %v158_v13 = vadd.f32 %v149_v8, %v125_v56  ;;  %v159_v16 = vadd.f32 %v148_v63, %v126_v37  ;;  %v1299_v63 = vsub.f32 %v1082_v25, %v1066_v6 }
 0x122   :  { %172 = vrot.lane.b32.xlu1 %v159_v16, %s957_s27  ;;  %v142_v19 = vpop.permute.xlu0 %141  ;;  %170 = vrot.lane.b32.xlu0 %v158_v13, %s957_s27 }
 0x123   :  { %v146_v20 = vsel %vm145_vm11, %v142_v19, %v144_v22  ;;  %v147_v28 = vsel %vm145_vm11, %v140_v43, %v142_v19  ;;  %vm56_vm11 = vcmp.lt.s32.totalorder %v1059_v61, 7 }
 0x124   :  { %v1247_v17 = vadd.f32 %v147_v28, %v127_v15  ;;  %v1249_v32 = vadd.f32 %v146_v20, %v128_v3 }
 0x126   :  { %176 = vrot.lane.b32.xlu1 %v1249_v32, %s957_s27  ;;  %174 = vrot.lane.b32.xlu0 %v1247_v17, %s957_s27 }
 0x18c   :  { %v165_v11 = vpop.permute.xlu1 %164  ;;  %v163_v41 = vpop.permute.xlu0 %162 }
 0x18d   :  { %v185_v3 = vsel %vm178_vm12, %v163_v41, %v165_v11 }
 0x18e   :  { %v1277_v60 = vadd.f32 %v185_v3, %v155_v33 }
 0x190   :  { %v169_v47 = vpop.permute.xlu1 %168  ;;  %v167_v52 = vpop.permute.xlu0 %166 }
 0x191   :  { %v183_v44 = vsel %vm178_vm12, %v167_v52, %v169_v47  ;;  %v184_v37 = vsel %vm178_vm12, %v165_v11, %v167_v52 }
 0x192   :  { %v189_v42 = vadd.f32 %v184_v37, %v156_v62  ;;  %v190_v45 = vadd.f32 %v183_v44, %v157_v48  ;;  %v1325_v37 = vsub.f32 %v1141_v49, %v1126_v27 }
 0x194   :  { %v412_v0 = vcombine.low %v189_v42, %v190_v45  ;;  %v1275_v54 = vpop.permute.xlu1 %172  ;;  %v171_v15 = vpop.permute.xlu0 %170  ;;  %v341_v57 = vmul.f32 %v324_v46, %v189_v42  ;;  %v342_v43 = vmul.f32 %v332_v53, %v190_v45 }
 0x195   :  { %v181_v30 = vsel %vm178_vm12, %v171_v15, %v1275_v54  ;;  %v182_v35 = vsel %vm178_vm12, %v169_v47, %v171_v15 }
 0x196   :  { %v420_v9 = vmul.f32 %v412_v0, %v1027_v23  ;;  %v331_v23 = vcombine.high %v1262_v51, %v1262_v51  ;;  %v349_v40 = vsel %vm62_vm4, %v341_v57, 0.0  ;;  %v350_v59 = vsel %vm63_vm5, %v342_v43, 0.0 }
 0x197   :  { %v1291_v62 = vadd.f32 %v182_v35, %v158_v13  ;;  %v1293_v48 = vadd.f32 %v181_v30, %v159_v16  ;;  %v444_v8 = vmul.f32 %v412_v0, %v985_v4  ;;  %v357_v20 = vand.u32 2147483647, %v349_v40 }
 0x198   :  { %v428_v58 = vcombine.high %v420_v9, %v420_v9  ;;  %v437_v56 = vsel %vm70_vm13, %v420_v9, 0.0  ;;  %v340_v33 = vmul.f32 %v331_v23, %v1277_v60  ;;  %v1295_v50 = vpop.permute.xlu1 %176  ;;  %v358_v28 = vand.u32 2147483647, %v350_v59 }
 0x199   :  { %920 = vlog2.f32 %v437_v56  ;;  %v493_v22 = vsub.f32 1.0, %v437_v56  ;;  %v1304_v19 = vcombine.low %v1291_v62, %v1293_v48  ;;  %v373_v11 = vmul.f32 0.5, %v349_v40 }
 0x19a   :  { %v438_v21 = vsel %vm71_vm0, %v428_v58, 0.0  ;;  %v186_v13 = vsel %vm178_vm12, %v1295_v50, %v163_v41  ;;  %v1309_v16 = vsel %vm61_vm8, %v340_v33, 0.0  ;;  %v374_v52 = vmul.f32 0.5, %v350_v59 }
 0x19b   :  { %922 = vlog2.f32 %v438_v21  ;;  %v494_v24 = vsub.f32 1.0, %v438_v21  ;;  %v421_v47 = vmul.f32 %v1304_v19, %v1082_v25  ;;  %v333_v4 = vcombine.high %v1299_v63, %v1299_v63 }
 0x19c   :  { %924 = vlog2.f32 %v493_v22  ;;  %v452_v41 = vcombine.high %v444_v8, %v444_v8  ;;  %v187_v25 = vadd.f32 %v186_v13, %v1232_v34  ;;  %v356_v45 = vand.u32 2147483647, %v1309_v16 }
 0x19d   :  { %926 = vlog2.f32 %v494_v24  ;;  %v429_v44 = vcombine.high %v421_v47, %v421_v47  ;;  %vm1328_vm4 = vcmp.lt.f32.partialorder %v357_v20, 1.0  ;;  %vm1332_vm5 = vcmp.lt.f32.partialorder %v358_v28, 1.0 }
 0x19e   :  { %v381_v3 = vmul.f32 %v373_v11, %v349_v40  ;;  %v888_v34 = vadd.f32 -0.5, %v357_v20  ;;  %v439_v58 = vsel %vm72_vm9, %v421_v47, 0.0  ;;  %vm52_vm8 = vcmp.lt.s32.totalorder %v995_v7, 7 }
 0x19f   :  { %v440_v56 = vsel %vm73_vm14, %v429_v44, 0.0  ;;  %v382_v23 = vmul.f32 %v374_v52, %v350_v59  ;;  %v889_v57 = vadd.f32 -0.5, %v358_v28  ;;  %v461_v43 = vsel %vm70_vm13, %v444_v8, 0.0  ;;  %vm1360_vm13 = vmand %vm48_vm10, %vm56_vm11 }
 0x1a0   :  { %v462_v30 = vsel %vm71_vm0, %v452_v41, 0.0  ;;  %v411_v40 = vcombine.low %v187_v25, %v1277_v60  ;;  %v495_v11 = vsub.f32 1.0, %v439_v58  ;;  %v496_v13 = vsub.f32 1.0, %v440_v56  ;;  %vm65_vm10 = vmand %vm49_vm1, %vm57_vm2 }
 0x1a1   :  { %v372_v47 = vmul.f32 0.5, %v1309_v16  ;;  %v397_v59 = vsel %vm1328_vm4, %v381_v3, %v888_v34  ;;  %v533_v8 = vsub.f32 1.0, %v461_v43  ;;  %v398_v28 = vsel %vm1332_vm5, %v382_v23, %v889_v57  ;;  %vm60_vm11 = vmand %vm44_vm7, %vm52_vm8 }
 0x1a2   :  { %v534_v52 = vsub.f32 1.0, %v462_v30  ;;  %928 = vlog2.f32 %v496_v13  ;;  %v419_v60 = vmul.f32 %v411_v40, %v991_v5  ;;  %v344_v3 = vmul.f32 %v333_v4, %v1293_v48 }
 0x1a3   :  { %v921_v42 = vpop.eup %920  ;;  %930 = vlog2.f32 %v440_v56  ;;  %vm1369_vm0 = vcmp.lt.f32.partialorder %v356_v45, 1.0  ;;  %v572_v56 = vcombine.low %v397_v59, %v398_v28  ;;  %v1378_v48 = vmul.f32 %v372_v47, %v1309_v16 }
 0x1a4   :  { %v472_v9 = vmul.f32 0.6931472, %v921_v42  ;;  %932 = vlog2.f32 %v495_v11  ;;  %v427_v34 = vcombine.high %v419_v60, %v419_v60  ;;  %v435_v5 = vsel %vm68_vm15, %v419_v60, 0.0 }
 0x1a5   :  { %v923_v53 = vpop.eup %922  ;;  %934 = vlog2.f32 %v439_v58  ;;  %v445_v4 = vmul.f32 %v1304_v19, %v1066_v6  ;;  %v491_v58 = vsub.f32 1.0, %v435_v5  ;;  %v580_v19 = vadd.f32 %v572_v56, %v1143_v31 }
 0x1a6   :  { %v925_v15 = vpop.eup %924  ;;  %v474_v21 = vmul.f32 0.6931472, %v923_v53  ;;  %v485_v24 = vmax.f32 %v472_v9, -100.0  ;;  %v343_v9 = vmul.f32 %v1299_v63, %v1291_v62  ;;  %v436_v23 = vsel %vm69_vm6, %v427_v34, 0.0 }
 0x1a7   :  { %v927_v22 = vpop.eup %926  ;;  %v504_v33 = vmul.f32 0.6931472, %v925_v15  ;;  %v339_v15 = vmul.f32 %v1262_v51, %v187_v25  ;;  %936 = vlog2.f32 %v435_v5  ;;  %v492_v6 = vsub.f32 1.0, %v436_v23 }
 0x1a8   :  { %v486_v35 = vmax.f32 %v474_v21, -100.0  ;;  %v506_v20 = vmul.f32 0.6931472, %v927_v22  ;;  %v525_v41 = vmul.f32 %v485_v24, %v461_v43  ;;  %v175_v21 = vpop.permute.xlu0 %174  ;;  %v351_v22 = vsel %vm1360_vm13, %v343_v9, 0.0 }
 0x1a9   :  { %v517_v14 = vmax.f32 %v504_v33, -100.0  ;;  %938 = vlog2.f32 %v436_v23  ;;  %v1393_v51 = vadd.f32 -0.5, %v356_v45  ;;  %v453_v24 = vcombine.high %v445_v4, %v445_v4 }
 0x1aa   :  { %v518_v55 = vmax.f32 %v506_v20, -100.0  ;;  %v526_v42 = vmul.f32 %v486_v35, %v462_v30  ;;  %v352_v30 = vsel %vm65_vm10, %v344_v3, 0.0  ;;  %940 = vlog2.f32 %v491_v58 }
 0x1ab   :  { %v541_v44 = vmul.f32 %v533_v8, %v517_v14  ;;  %v347_v33 = vsel %vm60_vm11, %v339_v15, 0.0  ;;  %942 = vlog2.f32 %v492_v6  ;;  %v180_v35 = vsel %vm178_vm12, %v1275_v54, %v175_v21 }
 0x1ac   :  { %v542_v53 = vmul.f32 %v534_v52, %v518_v55  ;;  %v929_v20 = vpop.eup %928  ;;  %v375_v11 = vmul.f32 0.5, %v351_v22  ;;  %v376_v13 = vmul.f32 0.5, %v352_v30  ;;  %v443_v47 = vmul.f32 %v411_v40, %v976_v1 }
 0x1ad   :  { %v549_v46 = vadd.f32 %v541_v44, %v525_v41  ;;  %v931_v59 = vpop.eup %930  ;;  %v359_v45 = vand.u32 2147483647, %v351_v22  ;;  %v179_v31 = vsel %vm178_vm12, %v175_v21, %v1295_v50  ;;  %v334_v14 = vcombine.high %v1325_v37, %v1325_v37 }
 0x1ae   :  { %v550_v63 = vadd.f32 %v542_v53, %v526_v42  ;;  %v933_v8 = vpop.eup %932  ;;  %v396_v54 = vsel %vm1369_vm0, %v1378_v48, %v1393_v51  ;;  %v360_v28 = vand.u32 2147483647, %v352_v30  ;;  %v371_v55 = vmul.f32 0.5, %v347_v33 }
 0x1af   :  { %v557_v57 = vsub.f32 0.0, %v549_v46  ;;  %v1410_v1 = vadd.f32 %v180_v35, %v1247_v17  ;;  %v463_v40 = vsel %vm72_vm9, %v445_v4, 0.0  ;;  %v464_v2 = vsel %vm73_vm14, %v453_v24, 0.0  ;;  %v935_v41 = vpop.eup %934 }
 0x1b0   :  { %v558_v43 = vsub.f32 0.0, %v550_v63  ;;  %v510_v50 = vmul.f32 0.6931472, %v929_v20  ;;  %v355_v52 = vand.u32 2147483647, %v347_v33  ;;  %v1416_v44 = vmul.f32 %v375_v11, %v351_v22 }
 0x1b1   :  { %v1418_v60 = vmul.f32 %v376_v13, %v352_v30  ;;  %v451_v42 = vcombine.high %v443_v47, %v443_v47  ;;  %v1421_v53 = vadd.f32 %v179_v31, %v1249_v32  ;;  %v1423_v17 = vadd.f32 -0.5, %v359_v45  ;;  %v937_v0 = vpop.eup %936 }
 0x1b2   :  { %v592_v25 = vcombine.low %v557_v57, %v558_v43  ;;  %v478_v46 = vmul.f32 0.6931472, %v931_v59  ;;  %v508_v61 = vmul.f32 0.6931472, %v933_v8  ;;  %vm1425_vm12 = vcmp.lt.f32.partialorder %v359_v45, 1.0 }
 0x1b3   :  { %vm1429_vm9 = vcmp.lt.f32.partialorder %v360_v28, 1.0  ;;  %v1433_v34 = vadd.f32 -0.5, %v360_v28  ;;  %v535_v5 = vsub.f32 1.0, %v463_v40  ;;  %v536_v63 = vsub.f32 1.0, %v464_v2  ;;  %v939_v56 = vpop.eup %938 }
 0x1b4   :  { %v600_v16 = vadd.f32 %v592_v25, %v580_v19  ;;  %v379_v32 = vmul.f32 %v371_v55, %v347_v33  ;;  %v476_v4 = vmul.f32 0.6931472, %v935_v41  ;;  %v520_v15 = vmax.f32 %v510_v50, -100.0  ;;  %v941_v43 = vpop.eup %940 }
 0x1b5   :  { %v886_v23 = vadd.f32 -0.5, %v355_v52  ;;  %v468_v57 = vmul.f32 0.6931472, %v937_v0  ;;  %vm1435_vm14 = vcmp.lt.f32.partialorder %v355_v52, 1.0  ;;  %v459_v21 = vsel %vm68_vm15, %v443_v47, 0.0  ;;  %v943_v6 = vpop.eup %942 }
 0x1b6   :  { %v640_v9 = vcombine.high %v600_v16, %v600_v16  ;;  %v460_v22 = vsel %vm69_vm6, %v451_v42, 0.0  ;;  %v470_v30 = vmul.f32 0.6931472, %v939_v56  ;;  %vm50_vm1 = vcmp.gt.s32.totalorder %v1132_v26, 0 }
 0x1b7   :  { %vm58_vm2 = vcmp.lt.s32.totalorder %v1132_v26, 7  ;;  %v488_v25 = vmax.f32 %v478_v46, -100.0  ;;  %v519_v24 = vmax.f32 %v508_v61, -100.0  ;;  %v483_v33 = vmax.f32 %v468_v57, -100.0 }
 0x1b8   :  { %v669_v19 = vsel %vm647_vm3, %v640_v9, 0.0  ;;  %vm51_vm4 = vcmp.gt.s32.totalorder %v1163_v18, 0  ;;  %vm59_vm5 = vcmp.lt.s32.totalorder %v1163_v18, 7  ;;  %v662_v7 = vsel %vm647_vm3, %v600_v16, 0.0  ;;  %vm66_vm7 = vmand %vm50_vm1, %vm58_vm2 }
 0x1b9   :  { %v484_v35 = vmax.f32 %v470_v30, -100.0  ;;  %v500_v38 = vmul.f32 0.6931472, %v941_v43  ;;  %v502_v20 = vmul.f32 0.6931472, %v943_v6  ;;  %v487_v11 = vmax.f32 %v476_v4, -100.0  ;;  %vm67_vm8 = vmand %vm51_vm4, %vm59_vm5 }
 0x1ba   :  { %v544_v13 = vmul.f32 %v536_v63, %v520_v15  ;;  %v395_v47 = vsel %vm1435_vm14, %v379_v32, %v886_v23  ;;  %v531_v59 = vsub.f32 1.0, %v459_v21  ;;  %v670_v45 = vrot.slane %v669_v19, 4 }
 0x1bb   :  { %v515_v31 = vmax.f32 %v500_v38, -100.0  ;;  %v516_v8 = vmax.f32 %v502_v20, -100.0  ;;  %v532_v28 = vsub.f32 1.0, %v460_v22  ;;  %v663_v55 = vrot.slane %v662_v7, 4 }
 0x1bc   :  { %v528_v50 = vmul.f32 %v488_v25, %v464_v2  ;;  %v543_v52 = vmul.f32 %v535_v5, %v519_v24  ;;  %v523_v41 = vmul.f32 %v483_v33, %v459_v21  ;;  %v524_v42 = vmul.f32 %v484_v35, %v460_v22 }
 0x1bd   :  { %v539_v9 = vmul.f32 %v531_v59, %v515_v31  ;;  %v540_v16 = vmul.f32 %v532_v28, %v516_v8  ;;  %v414_v46 = vcombine.low %v1410_v1, %v1421_v53  ;;  %v527_v61 = vmul.f32 %v487_v11, %v463_v40 }
 0x1be   :  { %v552_v0 = vadd.f32 %v544_v13, %v528_v50  ;;  %v571_v63 = vcombine.low %v395_v47, %v396_v54  ;;  %vm74_vm15 = vcmp.eq.s32.totalorder %v1132_v26, 7  ;;  %v671_v32 = vadd.f32 %v670_v45, %v669_v19 }
 0x1bf   :  { %v547_v2 = vadd.f32 %v539_v9, %v523_v41  ;;  %v548_v5 = vadd.f32 %v540_v16, %v524_v42  ;;  %v422_v56 = vmul.f32 %v414_v46, %v1141_v49  ;;  %v399_v4 = vsel %vm1425_vm12, %v1416_v44, %v1423_v17 }
 0x1c0   :  { %v400_v62 = vsel %vm1429_vm9, %v1418_v60, %v1433_v34  ;;  %v551_v40 = vadd.f32 %v543_v52, %v527_v61  ;;  %vm75_vm6 = vcmp.eq.s32.totalorder %v1163_v18, 7  ;;  %v664_v48 = vadd.f32 %v663_v55, %v662_v7 }
 0x1c1   :  { %v555_v51 = vsub.f32 0.0, %v547_v2  ;;  %v556_v54 = vsub.f32 0.0, %v548_v5  ;;  %v345_v15 = vmul.f32 %v1325_v37, %v1410_v1  ;;  %v560_v49 = vsub.f32 0.0, %v552_v0 }
 0x1c2   :  { %v346_v44 = vmul.f32 %v334_v14, %v1421_v53  ;;  %v430_v60 = vcombine.high %v422_v56, %v422_v56  ;;  %v441_v17 = vsel %vm74_vm15, %v422_v56, 0.0  ;;  %v672_v36 = vrot.slane %v671_v32, 2 }
 0x1c3   :  { %v573_v3 = vcombine.low %v399_v4, %v400_v62  ;;  %v579_v34 = vadd.f32 %v571_v63, %v1118_v12  ;;  %v591_v1 = vcombine.low %v555_v51, %v556_v54  ;;  %v559_v23 = vsub.f32 0.0, %v551_v40 }
 0x1c4   :  { %v442_v57 = vsel %vm75_vm6, %v430_v60, 0.0  ;;  %944 = vlog2.f32 %v441_v17  ;;  %v497_v37 = vsub.f32 1.0, %v441_v17  ;;  %v665_v14 = vrot.slane %v664_v48, 2 }
 0x1c5   :  { %v599_v53 = vadd.f32 %v591_v1, %v579_v34  ;;  %v353_v43 = vsel %vm66_vm7, %v345_v15, 0.0  ;;  %946 = vlog2.f32 %v442_v57  ;;  %v593_v58 = vcombine.low %v559_v23, %v560_v49 }
 0x1c6   :  { %v354_v21 = vsel %vm67_vm8, %v346_v44, 0.0  ;;  %v498_v22 = vsub.f32 1.0, %v442_v57  ;;  %948 = vlog2.f32 %v497_v37  ;;  %v673_v12 = vadd.f32 %v672_v36, %v671_v32 }
 0x1c7   :  { %v639_v30 = vcombine.high %v599_v53, %v599_v53  ;;  %v648_v6 = vsel %vm647_vm3, %v599_v53, 0.0  ;;  %v581_v19 = vadd.f32 %v573_v3, %v1186_v29  ;;  %v666_v24 = vadd.f32 %v665_v14, %v664_v48 }
 0x1c8   :  { %v649_v25 = vrot.slane %v648_v6, 4  ;;  %950 = vlog2.f32 %v498_v22  ;;  %v361_v7 = vand.u32 2147483647, %v353_v43  ;;  %v362_v35 = vand.u32 2147483647, %v354_v21 }
 0x1c9   :  { %v655_v33 = vsel %vm647_vm3, %v639_v30, 0.0  ;;  %v601_v38 = vadd.f32 %v593_v58, %v581_v19  ;;  %v446_v13 = vmul.f32 %v414_v46, %v1126_v27  ;;  %v674_v47 = vrot.slane %v673_v12, 1 }
 0x1ca   :  { %v650_v20 = vadd.f32 %v649_v25, %v648_v6  ;;  %v656_v11 = vrot.slane %v655_v33, 4  ;;  %v377_v59 = vmul.f32 0.5, %v353_v43  ;;  %v378_v45 = vmul.f32 0.5, %v354_v21 }
 0x1cb   :  { %v667_v28 = vrot.slane %v666_v24, 1  ;;  %vm1492_vm13 = vcmp.lt.f32.partialorder %v361_v7, 1.0  ;;  %vm1496_vm0 = vcmp.lt.f32.partialorder %v362_v35, 1.0  ;;  %v641_v52 = vcombine.high %v601_v38, %v601_v38 }
 0x1cc   :  { %v651_v31 = vrot.slane %v650_v20, 2  ;;  %v657_v8 = vadd.f32 %v656_v11, %v655_v33  ;;  %v454_v9 = vcombine.high %v446_v13, %v446_v13  ;;  %v675_v16 = vadd.f32 %v674_v47, %v673_v12 }
 0x1cd   :  { %v385_v46 = vmul.f32 %v377_v59, %v353_v43  ;;  %v386_v61 = vmul.f32 %v378_v45, %v354_v21  ;;  %v465_v5 = vsel %vm74_vm15, %v446_v13, 0.0  ;;  %v892_v4 = vadd.f32 -0.5, %v361_v7 }
 0x1ce   :  { %v945_v50 = vpop.eup %944  ;;  %v652_v41 = vadd.f32 %v651_v31, %v650_v20  ;;  %v658_v42 = vrot.slane %v657_v8, 2  ;;  %v893_v62 = vadd.f32 -0.5, %v362_v35  ;;  %v668_v54 = vadd.f32 %v667_v28, %v666_v24 }
 0x1cf   :  { %v947_v27 = vpop.eup %946  ;;  %v480_v0 = vmul.f32 0.6931472, %v945_v50  ;;  %v683_v15 = vsel %vm647_vm3, %v641_v52, 0.0  ;;  %v466_v44 = vsel %vm75_vm6, %v454_v9, 0.0  ;;  %v537_v3 = vsub.f32 1.0, %v465_v5 }
 0x1d0   :  { %v949_v63 = vpop.eup %948  ;;  %v653_v32 = vrot.slane %v652_v41, 1  ;;  %v659_v2 = vadd.f32 %v658_v42, %v657_v8  ;;  %v482_v56 = vmul.f32 0.6931472, %v947_v27  ;;  %v777_v34 = vcombine.low %v668_v54, %v675_v16 }
 0x1d1   :  { %v489_v40 = vmax.f32 %v480_v0, -100.0  ;;  %v512_v48 = vmul.f32 0.6931472, %v949_v63  ;;  %v676_v26 = vsel %vm647_vm3, %v601_v38, 0.0  ;;  %v538_v14 = vsub.f32 1.0, %v466_v44 }
 0x1d2   :  { %v951_v51 = vpop.eup %950  ;;  %v660_v49 = vrot.slane %v659_v2, 1  ;;  %v490_v60 = vmax.f32 %v482_v56, -100.0  ;;  %v654_v1 = vadd.f32 %v653_v32, %v652_v41  ;;  %v684_v43 = vrot.slane %v683_v15, 4 }
 0x1d3   :  { %v514_v17 = vmul.f32 0.6931472, %v951_v51  ;;  %v521_v36 = vmax.f32 %v512_v48, -100.0  ;;  %v529_v37 = vmul.f32 %v489_v40, %v465_v5  ;;  %v401_v21 = vsel %vm1492_vm13, %v385_v46, %v892_v4 }
 0x1d4   :  { %v661_v23 = vadd.f32 %v660_v49, %v659_v2  ;;  %v402_v18 = vsel %vm1496_vm0, %v386_v61, %v893_v62  ;;  %v530_v22 = vmul.f32 %v490_v60, %v466_v44  ;;  %v793_v6 = vrot.slane %v777_v34, %v1189_v39 }
 0x1d5   :  { %v522_v57 = vmax.f32 %v514_v17, -100.0  ;;  %v545_v53 = vmul.f32 %v537_v3, %v521_v36  ;;  %v677_v19 = vrot.slane %v676_v26, 4  ;;  %v574_v33 = vcombine.low %v401_v21, %v402_v18 }
 0x1d6   :  { %v776_v58 = vcombine.low %v654_v1, %v661_v23  ;;  %v685_v7 = vadd.f32 %v684_v43, %v683_v15 }
 0x1d7   :  { %v546_v12 = vmul.f32 %v538_v14, %v522_v57  ;;  %v553_v30 = vadd.f32 %v545_v53, %v529_v37  ;;  %v678_v11 = vadd.f32 %v677_v19, %v676_v26  ;;  %v582_v13 = vadd.f32 %v574_v33, %v1196_v10 }
 0x1d8   :  { %v786_v25 = vrot.slane %v776_v58, %v1189_v39  ;;  %v686_v59 = vrot.slane %v685_v7, 2 }
 0x1d9   :  { %v554_v24 = vadd.f32 %v546_v12, %v530_v22  ;;  %v561_v38 = vsub.f32 0.0, %v553_v30  ;;  %v679_v31 = vrot.slane %v678_v11, 2 }
 0x1da   :  { %v808_v35 = vcombine.low %v786_v25, %v793_v6  ;;  %v687_v29 = vadd.f32 %v686_v59, %v685_v7 }
 0x1db   :  { %v562_v20 = vsub.f32 0.0, %v554_v24  ;;  %v680_v52 = vadd.f32 %v679_v31, %v678_v11 }
 0x1dc   :  { %v688_v9 = vrot.slane %v687_v29, 1  ;;  %v816_v15 = vrot.slane %v808_v35, %v1189_v39 }
 0x1dd   :  { %v594_v47 = vcombine.low %v561_v38, %v562_v20  ;;  %v681_v46 = vrot.slane %v680_v52, 1 }
 0x1de   :  { %v689_v0 = vadd.f32 %v688_v9, %v687_v29 }
 0x1df   :  { %v602_v45 = vadd.f32 %v594_v47, %v582_v13  ;;  %v682_v2 = vadd.f32 %v681_v46, %v680_v52 }
 0x1e1   :  { %v642_v8 = vcombine.high %v602_v45, %v602_v45  ;;  %v690_v28 = vsel %vm647_vm3, %v602_v45, 0.0  ;;  %v778_v56 = vcombine.low %v682_v2, %v689_v0 }
 0x1e2   :  { %v691_v55 = vrot.slane %v690_v28, 4 }
 0x1e3   :  { %v697_v50 = vsel %vm647_vm3, %v642_v8, 0.0  ;;  %v800_v48 = vrot.slane %v778_v56, %v1189_v39 }
 0x1e4   :  { %v692_v41 = vadd.f32 %v691_v55, %v690_v28  ;;  %v698_v42 = vrot.slane %v697_v50, 4 }
 0x1e6   :  { %v693_v27 = vrot.slane %v692_v41, 2  ;;  %v699_v16 = vadd.f32 %v698_v42, %v697_v50 }
 0x1e8   :  { %v694_v61 = vadd.f32 %v693_v27, %v692_v41  ;;  %v700_v10 = vrot.slane %v699_v16, 2 }
 0x1ea   :  { %v695_v63 = vrot.slane %v694_v61, 1  ;;  %v701_v32 = vadd.f32 %v700_v10, %v699_v16 }
 0x1ec   :  { %v702_v5 = vrot.slane %v701_v32, 1  ;;  %v696_v4 = vadd.f32 %v695_v63, %v694_v61 }
 0x1ee   :  { %v703_v62 = vadd.f32 %v702_v5, %v701_v32 }
 0x1f0   :  { %v779_v40 = vcombine.low %v696_v4, %v703_v62 }
 0x1f2   :  { %v807_v51 = vrot.slane %v779_v40, %v1189_v39 }
 0x1f4   :  { %v809_v54 = vcombine.low %v800_v48, %v807_v51 }
 0x1f6   :  { %v823_v49 = vrot.slane %v809_v54, %v1189_v39 }
 0x1f8   :  { %v824_v44 = vcombine.low %v816_v15, %v823_v49 }
 0x1fa   :  { %876 = vst [vmem:[%s1524_s2] sm:$0xff] %v824_v44 }

</bundles_post_ra>
